<compile_context>
chip_gen: v6e
topology: v6e:2x2x1
jax: 0.10.0
libtpu: 0.0.40
codegen_flags: <defaults>
</compile_context>

<pallas_src>
import jax
import jax.numpy as jnp
from jax.experimental import pallas as pl
from jax.experimental.pallas import tpu as pltpu

IN_FEATURES = 784     # 28 * 28
N3_PAD = 128          # layer-3 columns padded 1 -> 128 for a lane-dense MXU matmul
                      # (only column 0 is real; the HBM store stays (TM, 1))


def _round_up(x, m):
    return ((x + m - 1) // m) * m


def _mlp_kernel(x_ref,
                w0_ref, b0_ref,
                w1_ref, b1_ref,
                w2_ref, b2_ref,
                w3_ref, b3_ref,
                o_ref):
    """Fused MLP forward for one (TM, 784) f32 batch tile."""

    def leaky_relu(h, slope=0.2):
        return jnp.where(h >= 0, h, slope * h)

    # Layer 0: cast the streamed f32 tile to bf16 in-VMEM (VPU), bf16 x bf16 MXU
    # matmul with f32 accumulation.
    xb = x_ref[...].astype(jnp.bfloat16)                                # (TM, 784)
    h = jnp.dot(xb, w0_ref[...], preferred_element_type=jnp.float32)    # (TM, 256) f32
    h = leaky_relu(h + b0_ref[...])                                     # dropout == identity (eval)

    # Layers 1-2: tiny FLOP share, kernel is HBM-bound -> keep everything f32.
    h = jnp.dot(h, w1_ref[...], preferred_element_type=jnp.float32)     # (TM, 128)
    h = leaky_relu(h + b1_ref[...])

    h = jnp.dot(h, w2_ref[...], preferred_element_type=jnp.float32)     # (TM, 64)
    h = leaky_relu(h + b2_ref[...])

    # Layer 3: lane-dense (64, 128) padded weight in VMEM; keep only column 0.
    h = jnp.dot(h, w3_ref[...], preferred_element_type=jnp.float32)     # (TM, 128)
    z = h[:, 0:1] + b3_ref[...]                                         # (TM, 1)

    # sigmoid: exp and approx reciprocal both go to the EUP slot.
    o_ref[...] = pl.reciprocal(1.0 + jnp.exp(-z), approx=True)


def prepare_params(params):
    """One-time weight preparation (cast / pad); call once and reuse."""
    (w0, b0), (w1, b1), (w2, b2), (w3, b3) = params

    w0_p = w0.astype(jnp.bfloat16)                                   # (784, 256) bf16
    w1_p = w1.astype(jnp.float32)                                    # (256, 128) f32
    w2_p = w2.astype(jnp.float32)                                    # (128, 64)  f32
    w3_p = jnp.zeros((w3.shape[0], N3_PAD), jnp.float32)             # (64, 128)  f32
    w3_p = w3_p.at[:, :w3.shape[1]].set(w3.astype(jnp.float32))

    b0_p = b0.reshape(1, -1).astype(jnp.float32)                     # (1, 256)
    b1_p = b1.reshape(1, -1).astype(jnp.float32)                     # (1, 128)
    b2_p = b2.reshape(1, -1).astype(jnp.float32)                     # (1, 64)
    b3_p = b3.reshape(1, -1).astype(jnp.float32)                     # (1, 1)

    return (w0_p, b0_p, w1_p, b1_p, w2_p, b2_p, w3_p, b3_p)


def discriminator_forward(x, prepared, *, tm_cap=1024):
    """x: (B, 1, 28, 28) or (B, 784). `prepared` = prepare_params(params).
    Returns (B, 1) float32 sigmoid probabilities."""
    B = x.shape[0]
    x2d = x.reshape(B, IN_FEATURES).astype(jnp.float32)

    # Batch tile: >= 2 tiles when batch is big enough (v7x megacore), 16-aligned,
    # capped so the streamed block stays comfortably inside VMEM.
    TM = max(16, min(tm_cap, _round_up(-(-B // 2), 16)))
    B_pad = _round_up(B, TM)
    n_tiles = B_pad // TM

    if B_pad != B:
        x2d = jnp.pad(x2d, ((0, B_pad - B), (0, 0)))   # batch rows only, zero pad

    # Weights / biases: full-array blocks, constant index_map -> VMEM-resident.
    def resident(arr):
        return pl.BlockSpec(arr.shape, lambda i: (0, 0))

    weight_bytes = sum(int(a.size) * a.dtype.itemsize for a in prepared)
    flops_per_row = 2 * (IN_FEATURES * 256 + 256 * 128 + 128 * 64 + 64 * N3_PAD)
    cost = pl.CostEstimate(
        flops=B_pad * flops_per_row,
        transcendentals=2 * B_pad,                      # exp + approx reciprocal
        bytes_accessed=(B_pad * IN_FEATURES * 4        # f32 x stream
                        + B_pad * 4                    # f32 (B, 1) out stream
                        + weight_bytes))

    out = pl.pallas_call(
        _mlp_kernel,
        out_shape=jax.ShapeDtypeStruct((B_pad, 1), jnp.float32),
        grid=(n_tiles,),
        in_specs=[
            pl.BlockSpec((TM, IN_FEATURES), lambda i: (i, 0)),   # streamed x tile
            resident(prepared[0]), resident(prepared[1]),        # w0, b0
            resident(prepared[2]), resident(prepared[3]),        # w1, b1
            resident(prepared[4]), resident(prepared[5]),        # w2, b2
            resident(prepared[6]), resident(prepared[7]),        # w3, b3
        ],
        out_specs=pl.BlockSpec((TM, 1), lambda i: (i, 0)),
        compiler_params=pltpu.CompilerParams(
            dimension_semantics=("parallel",),
            vmem_limit_bytes=32 * 1024 * 1024),
        cost_estimate=cost,
    )(x2d, *prepared)

    return out[:B]


def init_params(key):
    """Deterministic init mimicking nn.Linear default (uniform +-1/sqrt(fan_in)).
    Weights stored as (in_features, out_features); biases as (1, out_features)."""
    dims = [(784, 256), (256, 128), (128, 64), (64, 1)]
    params = []
    for (fan_in, fan_out) in dims:
        key, kw, kb = jax.random.split(key, 3)
        bound = 1.0 / jnp.sqrt(fan_in)
        w = jax.random.uniform(kw, (fan_in, fan_out), jnp.float32, -bound, bound)
        b = jax.random.uniform(kb, (1, fan_out), jnp.float32, -bound, bound)
        params.append((w, b))
    return params


def reference_forward(x, params):
    """Plain-JAX f32 reference for correctness check."""
    B = x.shape[0]
    h = x.reshape(B, IN_FEATURES).astype(jnp.float32)
    (w0, b0), (w1, b1), (w2, b2), (w3, b3) = params
    lrelu = lambda t: jnp.where(t >= 0, t, 0.2 * t)
    h = lrelu(h @ w0 + b0)
    h = lrelu(h @ w1 + b1)
    h = lrelu(h @ w2 + b2)
    h = h @ w3 + b3
    return jax.nn.sigmoid(h)


if __name__ == "__main__":
    key = jax.random.PRNGKey(0)
    kx, kp = jax.random.split(key)

    B = 8
    x = jax.random.normal(kx, (B, 1, 28, 28), jnp.float32)
    params = init_params(kp)
    prepared = prepare_params(params)   # one-time weight prep, outside the per-call path

    y = discriminator_forward(x, prepared)
    y = jax.block_until_ready(y)

    y_ref = reference_forward(x, params)
    assert y.shape == (B, 1), f"bad output shape {y.shape}"
    # Only layer 0 runs in bf16 (f32 accumulation); allow a small tolerance.
    max_err = jnp.max(jnp.abs(y - y_ref))
    assert jnp.allclose(y, y_ref, atol=2e-2, rtol=2e-2), f"max abs err {max_err}"

    print("KERNEL_OK")
</pallas_src>

<mosaic_0001>
module attributes {stable_mosaic.version = 11 : i64} {
  func.func @_mlp_kernel(%arg0: i32, %arg1: memref<16x784xf32, #tpu.memory_space<vmem>>, %arg2: memref<784x256xbf16, #tpu.memory_space<vmem>>, %arg3: memref<1x256xf32, #tpu.memory_space<vmem>>, %arg4: memref<256x128xf32, #tpu.memory_space<vmem>>, %arg5: memref<1x128xf32, #tpu.memory_space<vmem>>, %arg6: memref<128x64xf32, #tpu.memory_space<vmem>>, %arg7: memref<1x64xf32, #tpu.memory_space<vmem>>, %arg8: memref<64x128xf32, #tpu.memory_space<vmem>>, %arg9: memref<1x1xf32, #tpu.memory_space<vmem>>, %arg10: memref<16x1xf32, #tpu.memory_space<vmem>>) attributes {dimension_semantics = [#tpu.dimension_semantics<parallel>], iteration_bounds = array<i64: 1>, scalar_prefetch = 0 : i64, scratch_operands = 0 : i64, tpu.core_type = #tpu.core_type<tc>, window_params = [{transform_indices = @transform_0, window_bounds = array<i64: 16, 784>}, {pipeline_mode = #tpu.pipeline_mode<synchronous>, transform_indices = @transform_1, window_bounds = array<i64: 784, 256>}, {pipeline_mode = #tpu.pipeline_mode<synchronous>, transform_indices = @transform_2, window_bounds = array<i64: 1, 256>}, {pipeline_mode = #tpu.pipeline_mode<synchronous>, transform_indices = @transform_3, window_bounds = array<i64: 256, 128>}, {pipeline_mode = #tpu.pipeline_mode<synchronous>, transform_indices = @transform_4, window_bounds = array<i64: 1, 128>}, {pipeline_mode = #tpu.pipeline_mode<synchronous>, transform_indices = @transform_5, window_bounds = array<i64: 128, 64>}, {pipeline_mode = #tpu.pipeline_mode<synchronous>, transform_indices = @transform_6, window_bounds = array<i64: 1, 64>}, {pipeline_mode = #tpu.pipeline_mode<synchronous>, transform_indices = @transform_7, window_bounds = array<i64: 64, 128>}, {pipeline_mode = #tpu.pipeline_mode<synchronous>, transform_indices = @transform_8, window_bounds = array<i64: 1, 1>}, {transform_indices = @transform_9, window_bounds = array<i64: 16, 1>}]} {
    %c0 = arith.constant 0 : index
    %c0_0 = arith.constant 0 : index
    %0 = vector.load %arg1[%c0, %c0_0] : memref<16x784xf32, #tpu.memory_space<vmem>>, vector<16x784xf32>
    %1 = arith.truncf %0 : vector<16x784xf32> to vector<16x784xbf16>
    %c0_1 = arith.constant 0 : index
    %c0_2 = arith.constant 0 : index
    %2 = vector.load %arg2[%c0_1, %c0_2] : memref<784x256xbf16, #tpu.memory_space<vmem>>, vector<784x256xbf16>
    %cst = arith.constant dense<0.000000e+00> : vector<16x256xf32>
    %3 = tpu.matmul %1, %2, %cst {dimension_numbers = #tpu.dot_dimension_numbers<[1], [0], [0], [1], [0, 0, 1, 1], [], []>} : vector<16x784xbf16>, vector<784x256xbf16>, vector<16x256xf32> -> vector<16x256xf32>
    %c0_3 = arith.constant 0 : index
    %c0_4 = arith.constant 0 : index
    %4 = vector.load %arg3[%c0_3, %c0_4] : memref<1x256xf32, #tpu.memory_space<vmem>>, vector<1x256xf32>
    %5 = vector.broadcast %4 : vector<1x256xf32> to vector<16x256xf32>
    %6 = arith.addf %3, %5 : vector<16x256xf32>
    %cst_5 = arith.constant 0.000000e+00 : f32
    %7 = vector.broadcast %cst_5 : f32 to vector<16x256xf32>
    %8 = arith.cmpf oge, %6, %7 : vector<16x256xf32>
    %cst_6 = arith.constant 2.000000e-01 : f32
    %9 = vector.broadcast %cst_6 : f32 to vector<16x256xf32>
    %10 = arith.mulf %9, %6 : vector<16x256xf32>
    %11 = arith.select %8, %6, %10 : vector<16x256xi1>, vector<16x256xf32>
    %c0_7 = arith.constant 0 : index
    %c0_8 = arith.constant 0 : index
    %12 = vector.load %arg4[%c0_7, %c0_8] : memref<256x128xf32, #tpu.memory_space<vmem>>, vector<256x128xf32>
    %cst_9 = arith.constant dense<0.000000e+00> : vector<16x128xf32>
    %13 = tpu.matmul %11, %12, %cst_9 {dimension_numbers = #tpu.dot_dimension_numbers<[1], [0], [0], [1], [0, 0, 1, 1], [], []>} : vector<16x256xf32>, vector<256x128xf32>, vector<16x128xf32> -> vector<16x128xf32>
    %c0_10 = arith.constant 0 : index
    %c0_11 = arith.constant 0 : index
    %14 = vector.load %arg5[%c0_10, %c0_11] : memref<1x128xf32, #tpu.memory_space<vmem>>, vector<1x128xf32>
    %15 = vector.broadcast %14 : vector<1x128xf32> to vector<16x128xf32>
    %16 = arith.addf %13, %15 : vector<16x128xf32>
    %cst_12 = arith.constant 0.000000e+00 : f32
    %17 = vector.broadcast %cst_12 : f32 to vector<16x128xf32>
    %18 = arith.cmpf oge, %16, %17 : vector<16x128xf32>
    %cst_13 = arith.constant 2.000000e-01 : f32
    %19 = vector.broadcast %cst_13 : f32 to vector<16x128xf32>
    %20 = arith.mulf %19, %16 : vector<16x128xf32>
    %21 = arith.select %18, %16, %20 : vector<16x128xi1>, vector<16x128xf32>
    %c0_14 = arith.constant 0 : index
    %c0_15 = arith.constant 0 : index
    %22 = vector.load %arg6[%c0_14, %c0_15] : memref<128x64xf32, #tpu.memory_space<vmem>>, vector<128x64xf32>
    %cst_16 = arith.constant dense<0.000000e+00> : vector<16x64xf32>
    %23 = tpu.matmul %21, %22, %cst_16 {dimension_numbers = #tpu.dot_dimension_numbers<[1], [0], [0], [1], [0, 0, 1, 1], [], []>} : vector<16x128xf32>, vector<128x64xf32>, vector<16x64xf32> -> vector<16x64xf32>
    %c0_17 = arith.constant 0 : index
    %c0_18 = arith.constant 0 : index
    %24 = vector.load %arg7[%c0_17, %c0_18] : memref<1x64xf32, #tpu.memory_space<vmem>>, vector<1x64xf32>
    %25 = vector.broadcast %24 : vector<1x64xf32> to vector<16x64xf32>
    %26 = arith.addf %23, %25 : vector<16x64xf32>
    %cst_19 = arith.constant 0.000000e+00 : f32
    %27 = vector.broadcast %cst_19 : f32 to vector<16x64xf32>
    %28 = arith.cmpf oge, %26, %27 : vector<16x64xf32>
    %cst_20 = arith.constant 2.000000e-01 : f32
    %29 = vector.broadcast %cst_20 : f32 to vector<16x64xf32>
    %30 = arith.mulf %29, %26 : vector<16x64xf32>
    %31 = arith.select %28, %26, %30 : vector<16x64xi1>, vector<16x64xf32>
    %c0_21 = arith.constant 0 : index
    %c0_22 = arith.constant 0 : index
    %32 = vector.load %arg8[%c0_21, %c0_22] : memref<64x128xf32, #tpu.memory_space<vmem>>, vector<64x128xf32>
    %cst_23 = arith.constant dense<0.000000e+00> : vector<16x128xf32>
    %33 = tpu.matmul %31, %32, %cst_23 {dimension_numbers = #tpu.dot_dimension_numbers<[1], [0], [0], [1], [0, 0, 1, 1], [], []>} : vector<16x64xf32>, vector<64x128xf32>, vector<16x128xf32> -> vector<16x128xf32>
    %34 = vector.extract_strided_slice %33 {offsets = [0, 0], sizes = [16, 1], strides = [1, 1]} : vector<16x128xf32> to vector<16x1xf32>
    %c0_24 = arith.constant 0 : index
    %c0_25 = arith.constant 0 : index
    %35 = vector.load %arg9[%c0_24, %c0_25] : memref<1x1xf32, #tpu.memory_space<vmem>>, vector<1x1xf32>
    %36 = vector.broadcast %35 : vector<1x1xf32> to vector<16x1xf32>
    %37 = arith.addf %34, %36 : vector<16x1xf32>
    %cst_26 = arith.constant 0.000000e+00 : f32
    %38 = vector.broadcast %cst_26 : f32 to vector<16x1xf32>
    %39 = arith.subf %38, %37 : vector<16x1xf32>
    %40 = math.exp %39 : vector<16x1xf32>
    %cst_27 = arith.constant 1.000000e+00 : f32
    %41 = vector.broadcast %cst_27 : f32 to vector<16x1xf32>
    %42 = arith.addf %41, %40 : vector<16x1xf32>
    %43 = tpu.reciprocal %42 {approx = true} : vector<16x1xf32> -> vector<16x1xf32>
    %c0_28 = arith.constant 0 : index
    %c0_29 = arith.constant 0 : index
    %44 = vector.load %arg10[%c0_28, %c0_29] : memref<16x1xf32, #tpu.memory_space<vmem>>, vector<16x1xf32>
    tpu.vector_store %arg10[%c0_28, %c0_29], %43 {strides = array<i32>} : memref<16x1xf32, #tpu.memory_space<vmem>>, vector<16x1xf32>,
    return
  }
  func.func @transform_0(%arg0: i32) -> (i32, i32) {
    %c0_i32 = arith.constant 0 : i32
    %c0_i32_0 = arith.constant 0 : i32
    return %arg0, %c0_i32 : i32, i32
  }
  func.func @transform_1(%arg0: i32) -> (i32, i32) {
    %c0_i32 = arith.constant 0 : i32
    %c0_i32_0 = arith.constant 0 : i32
    %c0_i32_1 = arith.constant 0 : i32
    return %c0_i32, %c0_i32_0 : i32, i32
  }
  func.func @transform_2(%arg0: i32) -> (i32, i32) {
    %c0_i32 = arith.constant 0 : i32
    %c0_i32_0 = arith.constant 0 : i32
    %c0_i32_1 = arith.constant 0 : i32
    return %c0_i32, %c0_i32_0 : i32, i32
  }
  func.func @transform_3(%arg0: i32) -> (i32, i32) {
    %c0_i32 = arith.constant 0 : i32
    %c0_i32_0 = arith.constant 0 : i32
    %c0_i32_1 = arith.constant 0 : i32
    return %c0_i32, %c0_i32_0 : i32, i32
  }
  func.func @transform_4(%arg0: i32) -> (i32, i32) {
    %c0_i32 = arith.constant 0 : i32
    %c0_i32_0 = arith.constant 0 : i32
    %c0_i32_1 = arith.constant 0 : i32
    return %c0_i32, %c0_i32_0 : i32, i32
  }
  func.func @transform_5(%arg0: i32) -> (i32, i32) {
    %c0_i32 = arith.constant 0 : i32
    %c0_i32_0 = arith.constant 0 : i32
    %c0_i32_1 = arith.constant 0 : i32
    return %c0_i32, %c0_i32_0 : i32, i32
  }
  func.func @transform_6(%arg0: i32) -> (i32, i32) {
    %c0_i32 = arith.constant 0 : i32
    %c0_i32_0 = arith.constant 0 : i32
    %c0_i32_1 = arith.constant 0 : i32
    return %c0_i32, %c0_i32_0 : i32, i32
  }
  func.func @transform_7(%arg0: i32) -> (i32, i32) {
    %c0_i32 = arith.constant 0 : i32
    %c0_i32_0 = arith.constant 0 : i32
    %c0_i32_1 = arith.constant 0 : i32
    return %c0_i32, %c0_i32_0 : i32, i32
  }
  func.func @transform_8(%arg0: i32) -> (i32, i32) {
    %c0_i32 = arith.constant 0 : i32
    %c0_i32_0 = arith.constant 0 : i32
    %c0_i32_1 = arith.constant 0 : i32
    return %c0_i32, %c0_i32_0 : i32, i32
  }
  func.func @transform_9(%arg0: i32) -> (i32, i32) {
    %c0_i32 = arith.constant 0 : i32
    %c0_i32_0 = arith.constant 0 : i32
    return %arg0, %c0_i32 : i32, i32
  }
}

</mosaic_0001>

<bundles_post_ra>
// kernel: tpu_custom_call.1
= control target key start
LH: loop header
LB: loop body
LE: loop exit
PB: predicated region body
PF: predicated region fallthrough
CT: control target
= control target key end

     0   :  { %s1835_s0 = inlined_call_operand.vmem [shape: f32[16,784], index: 0, kind: input, shape index: {}]   ;;  %s1836_s1 = inlined_call_operand.hbm [shape: bf16[784,256], index: 1, kind: input, shape index: {}]   ;;  %s1837_s2 = inlined_call_operand.vmem [shape: f32[1,256], index: 2, kind: input, shape index: {}]   ;;  %s1838_s3 = inlined_call_operand.hbm [shape: f32[256,128], index: 3, kind: input, shape index: {}]   ;;  %s1839_s4 = inlined_call_operand.vmem [shape: f32[1,128], index: 4, kind: input, shape index: {}]   ;;  %s1840_s5 = inlined_call_operand.vmem [shape: f32[128,64], index: 5, kind: input, shape index: {}]   ;;  %s1841_s6 = inlined_call_operand.vmem [shape: f32[1,64], index: 6, kind: input, shape index: {}]   ;;  %s1842_s7 = inlined_call_operand.vmem [shape: f32[64,128], index: 7, kind: input, shape index: {}]   ;;  %s1843_s8 = inlined_call_operand.<no memory space> [shape: f32[1,1], index: 8, kind: input, shape index: {}]   ;;  %s1844_s9 = inlined_call_operand.vmem [shape: f32[16,1], index: 9, kind: output, shape index: {}]  }
   0x1   :  { %v14_v0 = vstv %s1843_s8 }
   0x2   :  { %15 = vst [vmem:[#allocation2] sm:$0x1] %v14_v0 }
   0x3   :  { %16 = vsyncpa [#allocation4], 0 }
   0x4   :  { %17 = vsyncpa [#allocation6], 0  ;;  %s1642_s11 = smov [#allocation3]  }
   0x5   :  { %s25_s12 = sshll.u32 %s1642_s11, 4  ;;  %s26_s12 = int_to_ptr.vmem [resolvable:$true] %s25_s12 }
   0x6   :  { %s1606_s13 = scalar_lea.vmem %s26_s12, 12544  ;;  %p1611_p1 = scmp.lt.s32.totalorder %s26_s12, %s26_s12 }
   0x7   :  { %p1607_p0 = scmp.ne.s32.totalorder %s26_s12, %s1606_s13  ;;  %p1612_p2 = scmp.lt.s32.totalorder %s1606_s13, %s1606_s13 }
   0x9   :  { %p1613_p3 = por %p1612_p2, %p1611_p1 }
   0xb   :  { %p1614_p4 = pnand %p1613_p3, %p1607_p0 }
   0xd   :  { %1617 = shalt.err (!%p1614_p4)
}
   0xe   :  { %s1643_s14 = smov 128   ;;  %s1644_s15 = smov 8  }
   0xf   :  { %31 = dma.hbm_to_vmem [thread:$0]  %s1836_s1, 12544, %s26_s12, [#allocation4], %s1643_s14, %s1643_s14, %s1644_s15  }
  0x10   :  { %s1645_s8 = smov [#allocation5]  }
  0x11   :  { %s39_s18 = sshll.u32 %s1645_s8, 4  ;;  %s40_s18 = int_to_ptr.vmem [resolvable:$true] %s39_s18 }
  0x12   :  { %s1626_s19 = scalar_lea.vmem %s40_s18, 4096  ;;  %p1631_p6 = scmp.lt.s32.totalorder %s40_s18, %s40_s18 }
  0x13   :  { %p1627_p5 = scmp.ne.s32.totalorder %s40_s18, %s1626_s19  ;;  %p1632_p7 = scmp.lt.s32.totalorder %s1626_s19, %s1626_s19 }
  0x15   :  { %p1633_p8 = por %p1632_p7, %p1631_p6 }
  0x17   :  { %p1634_p9 = pnand %p1633_p8, %p1627_p5 }
  0x19   :  { %1637 = shalt.err (!%p1634_p9)
}
  0x1a   :  { %45 = dma.hbm_to_vmem [thread:$0]  %s1838_s3, 4096, %s40_s18, [#allocation6], %s1643_s14, %s1643_s14, %s1644_s15  }
  0x1b   :  { %1638 = dma.done.wait [#allocation4], 12544  }
  0x1c   :  { %1639 = vsyncadd [#allocation4], 4294954752 }
  0x1d   :  { %1640 = dma.done.wait [#allocation6], 4096  }
  0x1e   :  { %1641 = vsyncadd [#allocation6], 4294963200  ;;  %v1443_v1 = vld [vmem:[#allocation3 + $0x74] ss:$8 sps:$4 sm:$0xff]   ;;  %v1445_v2 = vld [vmem:[#allocation3 + $0x70] ss:$8 sps:$4 sm:$0xff]  }
  0x1f   :  { %688 = vmatprep.subr.bf16.mxu0 %v1443_v1  ;;  %v1446_v3 = vld [vmem:[#allocation3 + $0x174] ss:$8 sps:$4 sm:$0xff]   ;;  %v1448_v4 = vld [vmem:[#allocation3 + $0x170] ss:$8 sps:$4 sm:$0xff]   ;;  %v1449_v5 = vld [vmem:[#allocation3 + $0x64] ss:$8 sps:$4 sm:$0xff]  }
  0x20   :  { %689 = vmatpush1.bf16.msra.mxu0 %v1445_v2  ;;  %v1451_v6 = vld [vmem:[#allocation3 + $0x60] ss:$8 sps:$4 sm:$0xff]   ;;  %731 = vmatprep.subr.bf16.mxu1 %v1446_v3  ;;  %v1452_v7 = vld [vmem:[#allocation3 + $0x164] ss:$8 sps:$4 sm:$0xff]   ;;  %v1455_v9 = vld [vmem:[#allocation3 + $0x54] ss:$8 sps:$4 sm:$0xff]  }
  0x21   :  { %732 = vmatpush1.bf16.msra.mxu1 %v1448_v4  ;;  %690 = vmatprep.subr.bf16.mxu0 %v1449_v5  ;;  %v1454_v8 = vld [vmem:[#allocation3 + $0x160] ss:$8 sps:$4 sm:$0xff]   ;;  %v1457_v10 = vld [vmem:[#allocation3 + $0x50] ss:$8 sps:$4 sm:$0xff]   ;;  %v1458_v11 = vld [vmem:[#allocation3 + $0x154] ss:$8 sps:$4 sm:$0xff]  }
  0x22   :  { %733 = vmatprep.subr.bf16.mxu1 %v1452_v7  ;;  %v1461_v12 = vld [vmem:[#allocation3 + $0x44] ss:$8 sps:$4 sm:$0xff]   ;;  %v1460_v13 = vld [vmem:[#allocation3 + $0x150] ss:$8 sps:$4 sm:$0xff]   ;;  %v1463_v15 = vld [vmem:[#allocation3 + $0x40] ss:$8 sps:$4 sm:$0xff]  }
  0x23   :  { %v1464_v14 = vld [vmem:[#allocation3 + $0x144] ss:$8 sps:$4 sm:$0xff]   ;;  %v1467_v16 = vld [vmem:[#allocation3 + $0x34] ss:$8 sps:$4 sm:$0xff]   ;;  %v1466_v17 = vld [vmem:[#allocation3 + $0x140] ss:$8 sps:$4 sm:$0xff]  }
  0x24   :  { %691 = vmatpush1.bf16.msra.mxu0 %v1451_v6  ;;  %v1470_v18 = vld [vmem:[#allocation3 + $0x134] ss:$8 sps:$4 sm:$0xff]   ;;  %v1469_v19 = vld [vmem:[#allocation3 + $0x30] ss:$8 sps:$4 sm:$0xff]   ;;  %v1473_v20 = vld [vmem:[#allocation3 + $0x24] ss:$8 sps:$4 sm:$0xff]  }
  0x25   :  { %692 = vmatprep.subr.bf16.mxu0 %v1455_v9  ;;  %734 = vmatpush1.bf16.msra.mxu1 %v1454_v8  ;;  %v1472_v21 = vld [vmem:[#allocation3 + $0x130] ss:$8 sps:$4 sm:$0xff]   ;;  %v1476_v22 = vld [vmem:[#allocation3 + $0x124] ss:$8 sps:$4 sm:$0xff]   ;;  %v1475_v23 = vld [vmem:[#allocation3 + $0x20] ss:$8 sps:$4 sm:$0xff]  }
  0x26   :  { %735 = vmatprep.subr.bf16.mxu1 %v1458_v11  ;;  %v1479_v24 = vld [vmem:[#allocation3 + $0x14] ss:$8 sps:$4 sm:$0xff]   ;;  %v1478_v25 = vld [vmem:[#allocation3 + $0x120] ss:$8 sps:$4 sm:$0xff]   ;;  %v1481_v27 = vld [vmem:[#allocation3 + $0x10] ss:$8 sps:$4 sm:$0xff]  }
  0x27   :  { %v1482_v26 = vld [vmem:[#allocation3 + $0x114] ss:$8 sps:$4 sm:$0xff]   ;;  %v1485_v28 = vld [vmem:[#allocation3 + $0x4] ss:$8 sps:$4 sm:$0xff]   ;;  %v1484_v29 = vld [vmem:[#allocation3 + $0x110] ss:$8 sps:$4 sm:$0xff]  }
  0x28   :  { %693 = vmatpush1.bf16.msra.mxu0 %v1457_v10  ;;  %v1488_v30 = vld [vmem:[#allocation3 + $0x104] ss:$8 sps:$4 sm:$0xff]   ;;  %v1487_v31 = vld [vmem:[#allocation3] ss:$8 sps:$4 sm:$0xff]   ;;  %v1491_v32 = vld [vmem:[#allocation3 + $0xf4] ss:$8 sps:$4 sm:$0xff]  }
  0x29   :  { %694 = vmatprep.subr.bf16.mxu0 %v1461_v12  ;;  %736 = vmatpush1.bf16.msra.mxu1 %v1460_v13  ;;  %v1490_v33 = vld [vmem:[#allocation3 + $0x100] ss:$8 sps:$4 sm:$0xff]   ;;  %v1494_v34 = vld [vmem:[#allocation3 + $0x1f4] ss:$8 sps:$4 sm:$0xff]   ;;  %v1493_v35 = vld [vmem:[#allocation3 + $0xf0] ss:$8 sps:$4 sm:$0xff]  }
  0x2a   :  { %737 = vmatprep.subr.bf16.mxu1 %v1464_v14  ;;  %v1497_v36 = vld [vmem:[#allocation3 + $0xe4] ss:$8 sps:$4 sm:$0xff]   ;;  %v1496_v37 = vld [vmem:[#allocation3 + $0x1f0] ss:$8 sps:$4 sm:$0xff]   ;;  %v1499_v39 = vld [vmem:[#allocation3 + $0xe0] ss:$8 sps:$4 sm:$0xff]  }
  0x2b   :  { %v1500_v38 = vld [vmem:[#allocation3 + $0x1e4] ss:$8 sps:$4 sm:$0xff]   ;;  %v1503_v40 = vld [vmem:[#allocation3 + $0xd4] ss:$8 sps:$4 sm:$0xff]   ;;  %v1502_v41 = vld [vmem:[#allocation3 + $0x1e0] ss:$8 sps:$4 sm:$0xff]  }
  0x2c   :  { %695 = vmatpush1.bf16.msra.mxu0 %v1463_v15  ;;  %v1506_v42 = vld [vmem:[#allocation3 + $0x1d4] ss:$8 sps:$4 sm:$0xff]   ;;  %v1505_v43 = vld [vmem:[#allocation3 + $0xd0] ss:$8 sps:$4 sm:$0xff]   ;;  %v1509_v44 = vld [vmem:[#allocation3 + $0xc4] ss:$8 sps:$4 sm:$0xff]  }
  0x2d   :  { %696 = vmatprep.subr.bf16.mxu0 %v1467_v16  ;;  %738 = vmatpush1.bf16.msra.mxu1 %v1466_v17  ;;  %v1508_v45 = vld [vmem:[#allocation3 + $0x1d0] ss:$8 sps:$4 sm:$0xff]   ;;  %v1512_v46 = vld [vmem:[#allocation3 + $0x1c4] ss:$8 sps:$4 sm:$0xff]   ;;  %v1511_v49 = vld [vmem:[#allocation3 + $0xc0] ss:$8 sps:$4 sm:$0xff]  }
  0x2e   :  { %739 = vmatprep.subr.bf16.mxu1 %v1470_v18  ;;  %v64_v47 = vld [vmem:[%s1835_s0 + $0x8] sm:$0xff]  ;;  %v71_v48 = vld [vmem:[%s1835_s0 + $0x40] sm:$0xff]  ;;  %v66_v53 = vld [vmem:[%s1835_s0 + $0x18] sm:$0xff]  ;;  %vm684_vm0 = vcmask 130048   ;;  %vm1104_vm9 = vcmask 523264   ;;  %vm1205_vm10 = vcmask 7168  }
  0x2f   :  { %v78_v50 = vpack.c.bf16 %v71_v48, %v64_v47  ;;  %v1515_v51 = vld [vmem:[#allocation3 + $0xb4] ss:$8 sps:$4 sm:$0xff]   ;;  %v1514_v52 = vld [vmem:[#allocation3 + $0x1c0] ss:$8 sps:$4 sm:$0xff]   ;;  %v1517_v57 = vld [vmem:[#allocation3 + $0xb0] ss:$8 sps:$4 sm:$0xff]  }
  0x30   :  { %697 = vmatpush1.bf16.msra.mxu0 %v1469_v19  ;;  %v73_v54 = vld [vmem:[%s1835_s0 + $0x50] sm:$0xff]  ;;  %v1523_v61 = vld [vmem:[#allocation3 + $0xa0] ss:$8 sps:$4 sm:$0xff]   ;;  %v70_v8 = vld [vmem:[%s1835_s0 + $0x38] sm:$0xff] }
  0x31   :  { %698 = vmatprep.subr.bf16.mxu0 %v1473_v20  ;;  %740 = vmatpush1.bf16.msra.mxu1 %v1472_v21  ;;  %v1518_v55 = vld [vmem:[#allocation3 + $0x1b4] ss:$8 sps:$4 sm:$0xff]   ;;  %v80_v56 = vpack.c.bf16 %v73_v54, %v66_v53  ;;  %v1521_v58 = vld [vmem:[#allocation3 + $0xa4] ss:$8 sps:$4 sm:$0xff]   ;;  %v1520_v59 = vld [vmem:[#allocation3 + $0x1b0] ss:$8 sps:$4 sm:$0xff]  }
  0x32   :  { %741 = vmatprep.subr.bf16.mxu1 %v1476_v22  ;;  %720 = vmatprep.mubr.bf16.mxu0 %v78_v50  ;;  %v1524_v60 = vld [vmem:[#allocation3 + $0x1a4] ss:$8 sps:$4 sm:$0xff]   ;;  %v1527_v62 = vld [vmem:[#allocation3 + $0x94] ss:$8 sps:$4 sm:$0xff]   ;;  %v1526_v63 = vld [vmem:[#allocation3 + $0x1a0] ss:$8 sps:$4 sm:$0xff]  }
  0x33   :  { %763 = vmatprep.mubr.bf16.mxu1 %v80_v56  ;;  %v1530_v0 = vld [vmem:[#allocation3 + $0x194] ss:$8 sps:$4 sm:$0xff]   ;;  %v1529_v1 = vld [vmem:[#allocation3 + $0x90] ss:$8 sps:$4 sm:$0xff]   ;;  %v1533_v3 = vld [vmem:[#allocation3 + $0x84] ss:$8 sps:$4 sm:$0xff]  }
  0x34   :  { %699 = vmatpush1.bf16.msra.mxu0 %v1475_v23  ;;  %v1532_v2 = vld [vmem:[#allocation3 + $0x190] ss:$8 sps:$4 sm:$0xff]   ;;  %v1535_v4 = vld [vmem:[#allocation3 + $0x80] ss:$8 sps:$4 sm:$0xff]   ;;  %v1536_v5 = vld [vmem:[#allocation3 + $0x184] ss:$8 sps:$4 sm:$0xff]  }
  0x35   :  { %700 = vmatprep.subr.bf16.mxu0 %v1479_v24  ;;  %742 = vmatpush1.bf16.msra.mxu1 %v1478_v25  ;;  %v63_v6 = vld [vmem:[%s1835_s0] sm:$0xff]  ;;  %v65_v10 = vld [vmem:[%s1835_s0 + $0x10] sm:$0xff]  ;;  %v72_v11 = vld [vmem:[%s1835_s0 + $0x48] sm:$0xff]  ;;  %v1646_v21 = vmov 0  }
  0x36   :  { %743 = vmatprep.subr.bf16.mxu1 %v1482_v26  ;;  %v1538_v7 = vld [vmem:[#allocation3 + $0x180] ss:$8 sps:$4 sm:$0xff]   ;;  %v1541_v9 = vld [vmem:[#allocation3 + $0x274] ss:$8 sps:$4 sm:$0xff]   ;;  %v77_v12 = vpack.c.bf16 %v70_v8, %v63_v6  ;;  %v1539_v13 = vld [vmem:[#allocation3 + $0x270] ss:$8 sps:$4 sm:$0xff]   ;;  %v79_v14 = vpack.c.bf16 %v72_v11, %v65_v10 }
  0x37   :  { %v1544_v15 = vld [vmem:[#allocation3 + $0x264] ss:$8 sps:$4 sm:$0xff]   ;;  %v1584_v16 = vld [vmem:[#allocation3 + $0x300] ss:$8 sps:$4 sm:$0xff]   ;;  %v1547_v19 = vld [vmem:[#allocation3 + $0x254] ss:$8 sps:$4 sm:$0xff]  }
  0x38   :  { %701 = vmatpush1.bf16.msra.mxu0 %v1481_v27  ;;  %v1586_v17 = vld [vmem:[#allocation3 + $0x304] ss:$8 sps:$4 sm:$0xff]   ;;  %v1542_v18 = vld [vmem:[#allocation3 + $0x260] ss:$8 sps:$4 sm:$0xff]   ;;  %v1545_v26 = vld [vmem:[#allocation3 + $0x250] ss:$8 sps:$4 sm:$0xff]  }
  0x39   :  { %702 = vmatprep.subr.bf16.mxu0 %v1485_v28  ;;  %744 = vmatpush1.bf16.msra.mxu1 %v1484_v29  ;;  %v68_v20 = vld [vmem:[%s1835_s0 + $0x28] sm:$0xff]  ;;  %v69_v22 = vld [vmem:[%s1835_s0 + $0x30] sm:$0xff]  ;;  %v75_v24 = vld [vmem:[%s1835_s0 + $0x60] sm:$0xff] }
  0x3a   :  { %745 = vmatprep.subr.bf16.mxu1 %v1488_v30  ;;  %v76_v23 = vld [vmem:[%s1835_s0 + $0x68] sm:$0xff]  ;;  %v82_v25 = vpack.c.bf16 %v75_v24, %v68_v20  ;;  %v1553_v30 = vld [vmem:[#allocation3 + $0x234] ss:$8 sps:$4 sm:$0xff]   ;;  %v1575_v47 = vld [vmem:[#allocation3 + $0x2b0] ss:$8 sps:$4 sm:$0xff]  }
  0x3b   :  { %v1550_v27 = vld [vmem:[#allocation3 + $0x244] ss:$8 sps:$4 sm:$0xff]   ;;  %v83_v28 = vpack.c.bf16 %v76_v23, %v69_v22  ;;  %v1548_v29 = vld [vmem:[#allocation3 + $0x240] ss:$8 sps:$4 sm:$0xff]   ;;  %v1583_v50 = vld [vmem:[#allocation3 + $0x294] ss:$8 sps:$4 sm:$0xff]  }
  0x3c   :  { %703 = vmatpush1.bf16.msra.mxu0 %v1487_v31  ;;  %v1551_v31 = vld [vmem:[#allocation3 + $0x230] ss:$8 sps:$4 sm:$0xff]   ;;  %v1580_v48 = vld [vmem:[#allocation3 + $0x2a4] ss:$8 sps:$4 sm:$0xff]   ;;  %v1587_v53 = vld [vmem:[#allocation3 + $0x280] ss:$8 sps:$4 sm:$0xff]  }
  0x3d   :  { %704 = vmatprep.subr.bf16.mxu0 %v1491_v32  ;;  %746 = vmatpush1.bf16.msra.mxu1 %v1490_v33  ;;  %v1556_v32 = vld [vmem:[#allocation3 + $0x224] ss:$8 sps:$4 sm:$0xff]   ;;  %v1554_v33 = vld [vmem:[#allocation3 + $0x220] ss:$8 sps:$4 sm:$0xff]   ;;  %v881_v6 = vld [vmem:[#allocation5 + $0x48] sm:$0xff] }
  0x3e   :  { %747 = vmatprep.subr.bf16.mxu1 %v1494_v34  ;;  %v1559_v34 = vld [vmem:[#allocation3 + $0x214] ss:$8 sps:$4 sm:$0xff]   ;;  %v879_v10 = vld [vmem:[#allocation5 + $0x38] sm:$0xff]  ;;  %v894_v11 = vld [vmem:[#allocation5 + $0xb0] sm:$0xff] }
  0x3f   :  { %v67_v54 = vld [vmem:[%s1835_s0 + $0x20] sm:$0xff]  ;;  %v880_v8 = vld [vmem:[#allocation5 + $0x40] sm:$0xff] }
  0x40   :  { %705 = vmatpush2.bf16.msra.mxu0 %v1493_v35  ;;  %v1557_v35 = vld [vmem:[#allocation3 + $0x210] ss:$8 sps:$4 sm:$0xff]   ;;  %v874_v20 = vld [vmem:[#allocation5 + $0x10] sm:$0xff] }
  0x41   :  { %706 = vmatprep.subr.bf16.mxu0 %v1497_v36  ;;  %748 = vmatpush2.bf16.msra.mxu1 %v1496_v37  ;;  %v1562_v36 = vld [vmem:[#allocation3 + $0x204] ss:$8 sps:$4 sm:$0xff]   ;;  %v1560_v37 = vld [vmem:[#allocation3 + $0x200] ss:$8 sps:$4 sm:$0xff]   ;;  %v873_v22 = vld [vmem:[#allocation5 + $0x8] sm:$0xff] }
  0x42   :  { %749 = vmatprep.subr.bf16.mxu1 %v1500_v38  ;;  %v1565_v38 = vld [vmem:[#allocation3 + $0x2f4] ss:$8 sps:$4 sm:$0xff]  }
  0x43   :  { %v888_v23 = vld [vmem:[#allocation5 + $0x80] sm:$0xff] }
  0x44   :  { %707 = vmatpush2.bf16.msra.mxu0 %v1499_v39  ;;  %v1563_v39 = vld [vmem:[#allocation3 + $0x2f0] ss:$8 sps:$4 sm:$0xff]  }
  0x45   :  { %708 = vmatprep.subr.bf16.mxu0 %v1503_v40  ;;  %750 = vmatpush2.bf16.msra.mxu1 %v1502_v41  ;;  %v1568_v40 = vld [vmem:[#allocation3 + $0x2e4] ss:$8 sps:$4 sm:$0xff]   ;;  %v1566_v41 = vld [vmem:[#allocation3 + $0x2e0] ss:$8 sps:$4 sm:$0xff]   ;;  %v872_v24 = vld [vmem:[#allocation5] sm:$0xff] }
  0x46   :  { %751 = vmatprep.subr.bf16.mxu1 %v1506_v42  ;;  %v1571_v42 = vld [vmem:[#allocation3 + $0x2d4] ss:$8 sps:$4 sm:$0xff]  }
  0x48   :  { %709 = vmatpush2.bf16.msra.mxu0 %v1505_v43  ;;  %v1569_v43 = vld [vmem:[#allocation3 + $0x2d0] ss:$8 sps:$4 sm:$0xff]  }
  0x49   :  { %710 = vmatprep.subr.bf16.mxu0 %v1509_v44  ;;  %752 = vmatpush2.bf16.msra.mxu1 %v1508_v45  ;;  %v1574_v44 = vld [vmem:[#allocation3 + $0x2c4] ss:$8 sps:$4 sm:$0xff]   ;;  %v1572_v45 = vld [vmem:[#allocation3 + $0x2c0] ss:$8 sps:$4 sm:$0xff]  }
  0x4a   :  { %753 = vmatprep.subr.bf16.mxu1 %v1512_v46  ;;  %v1577_v46 = vld [vmem:[#allocation3 + $0x2b4] ss:$8 sps:$4 sm:$0xff]  }
  0x4c   :  { %711 = vmatpush2.bf16.msra.mxu0 %v1511_v49  ;;  %v1578_v49 = vld [vmem:[#allocation3 + $0x2a0] ss:$8 sps:$4 sm:$0xff]  }
  0x4d   :  { %712 = vmatprep.subr.bf16.mxu0 %v1515_v51  ;;  %754 = vmatpush2.bf16.msra.mxu1 %v1514_v52  ;;  %v1581_v51 = vld [vmem:[#allocation3 + $0x290] ss:$8 sps:$4 sm:$0xff]   ;;  %v1589_v52 = vld [vmem:[#allocation3 + $0x284] ss:$8 sps:$4 sm:$0xff]  }
  0x4e   :  { %755 = vmatprep.subr.bf16.mxu1 %v1518_v55  ;;  %v74_v55 = vld [vmem:[%s1835_s0 + $0x58] sm:$0xff] }
  0x4f   :  { %v81_v56 = vpack.c.bf16 %v74_v55, %v67_v54 }
  0x50   :  { %713 = vmatpush2.bf16.msra.mxu0 %v1517_v57  ;;  %v903_v57 = vld [vmem:[#allocation5 + $0xf8] sm:$0xff] }
  0x51   :  { %714 = vmatprep.subr.bf16.mxu0 %v1521_v58  ;;  %756 = vmatpush2.bf16.msra.mxu1 %v1520_v59  ;;  %v887_v58 = vld [vmem:[#allocation5 + $0x78] sm:$0xff]  ;;  %v902_v59 = vld [vmem:[#allocation5 + $0xf0] sm:$0xff] }
  0x52   :  { %757 = vmatprep.subr.bf16.mxu1 %v1524_v60  ;;  %v886_v60 = vld [vmem:[#allocation5 + $0x70] sm:$0xff] }
  0x54   :  { %715 = vmatpush2.bf16.msra.mxu0 %v1523_v61  ;;  %v901_v61 = vld [vmem:[#allocation5 + $0xe8] sm:$0xff] }
  0x55   :  { %716 = vmatprep.subr.bf16.mxu0 %v1527_v62  ;;  %758 = vmatpush2.bf16.msra.mxu1 %v1526_v63  ;;  %v885_v62 = vld [vmem:[#allocation5 + $0x68] sm:$0xff]  ;;  %v900_v63 = vld [vmem:[#allocation5 + $0xe0] sm:$0xff] }
  0x56   :  { %759 = vmatprep.subr.bf16.mxu1 %v1530_v0  ;;  %v884_v0 = vld [vmem:[#allocation5 + $0x60] sm:$0xff] }
  0x58   :  { %717 = vmatpush2.bf16.msra.mxu0 %v1529_v1  ;;  %v899_v1 = vld [vmem:[#allocation5 + $0xd8] sm:$0xff] }
  0x59   :  { %718 = vmatprep.subr.bf16.mxu0 %v1533_v3  ;;  %760 = vmatpush2.bf16.msra.mxu1 %v1532_v2  ;;  %v883_v2 = vld [vmem:[#allocation5 + $0x58] sm:$0xff]  ;;  %v898_v3 = vld [vmem:[#allocation5 + $0xd0] sm:$0xff] }
  0x5a   :  { %761 = vmatprep.subr.bf16.mxu1 %v1536_v5  ;;  %v897_v5 = vld [vmem:[#allocation5 + $0xc8] sm:$0xff] }
  0x5c   :  { %719 = vmatpush2.bf16.msra.mxu0 %v1535_v4  ;;  %v882_v4 = vld [vmem:[#allocation5 + $0x50] sm:$0xff] }
  0x5d   :  { %774 = vmatprep.subr.bf16.mxu0 %v1541_v9  ;;  %762 = vmatpush2.bf16.msra.mxu1 %v1538_v7  ;;  %v896_v7 = vld [vmem:[#allocation5 + $0xc0] sm:$0xff]  ;;  %v895_v9 = vld [vmem:[#allocation5 + $0xb8] sm:$0xff] }
  0x5e   :  { %831 = vmatprep.subr.bf16.mxu1 %v1586_v17  ;;  %v891_v17 = vld [vmem:[#allocation5 + $0x98] sm:$0xff] }
  0x5f   :  { %721 = vmatmul.mubr.bf16.vlgmr.msra.gmra.mxu0 %v77_v12  ;;  %v878_v12 = vld [vmem:[#allocation5 + $0x30] sm:$0xff] }
  0x60   :  { %775 = vmatpush1.bf16.msra.mxu0 %v1539_v13  ;;  %764 = vmatmul.mubr.bf16.vlgmr.msra.gmra.mxu1 %v79_v14  ;;  %v893_v13 = vld [vmem:[#allocation5 + $0xa8] sm:$0xff] }
  0x61   :  { %776 = vmatprep.subr.bf16.mxu0 %v1544_v15  ;;  %849 = vmatprep.mubr.bf16.mxu1 %v1646_v21  ;;  %v877_v14 = vld [vmem:[#allocation5 + $0x28] sm:$0xff]  ;;  %v892_v15 = vld [vmem:[#allocation5 + $0xa0] sm:$0xff] }
  0x62   :  { %832 = vmatpush1.bf16.msra.mxu1 %v1584_v16  ;;  %806 = vmatprep.mubr.bf16.mxu0 %v82_v25  ;;  %v876_v16 = vld [vmem:[#allocation5 + $0x20] sm:$0xff]  ;;  %v889_v21 = vld [vmem:[#allocation5 + $0x88] sm:$0xff] }
  0x63   :  { %1318 = vmatprep.subr.mxu1 %v903_v57  ;;  %v1007_v25 = vld [vmem:[%s1840_s5 + $0x78] sm:$0xff] }
  0x64   :  { %777 = vmatpush1.bf16.msra.mxu0 %v1542_v18  ;;  %v875_v18 = vld [vmem:[#allocation5 + $0x18] sm:$0xff] }
  0x65   :  { %778 = vmatprep.subr.bf16.mxu0 %v1547_v19  ;;  %v890_v19 = vld [vmem:[#allocation5 + $0x90] sm:$0xff] }
  0x68   :  { %779 = vmatpush1.bf16.msra.mxu0 %v1545_v26  ;;  %1312 = vmatmul.mubr.msk.bf16.vlgmr.msra.gmra.mxu1 %vm684_vm0, %v83_v28  ;;  %v184_v26 = vlaneseq }
  0x69   :  { %780 = vmatprep.subr.bf16.mxu0 %v1550_v27  ;;  %1319 = vmatpush3.msra.mxu1 %v887_v58 }
  0x6a   :  { %1320 = vmatprep.subr.mxu1 %v902_v59  ;;  %v185_v28 = vshrl.u32 %v184_v26, 7  ;;  %v1101_v26 = vld [vmem:[%s1842_s7 + $0x28] sm:$0xff] }
  0x6b   :  { %1321 = vmatpush3.msra.mxu1 %v886_v60 }
  0x6c   :  { %781 = vmatpush1.bf16.msra.mxu0 %v1548_v29  ;;  %1322 = vmatprep.subr.mxu1 %v901_v61 }
  0x6d   :  { %782 = vmatprep.subr.bf16.mxu0 %v1553_v30  ;;  %1323 = vmatpush3.msra.mxu1 %v885_v62 }
  0x6e   :  { %1324 = vmatprep.subr.mxu1 %v900_v63 }
  0x6f   :  { %1325 = vmatpush3.msra.mxu1 %v884_v0 }
  0x70   :  { %783 = vmatpush1.bf16.msra.mxu0 %v1551_v31  ;;  %1326 = vmatprep.subr.mxu1 %v899_v1  ;;  %v186_v31 = vsub.s32 0, %v185_v28 }
  0x71   :  { %784 = vmatprep.subr.bf16.mxu0 %v1556_v32  ;;  %1327 = vmatpush3.msra.mxu1 %v883_v2  ;;  %v182_v32 = vld [vmem:[%s1837_s2] sm:$0x3] }
  0x72   :  { %1328 = vmatprep.subr.mxu1 %v898_v3 }
  0x73   :  { %1329 = vmatpush3.msra.mxu1 %v882_v4 }
  0x74   :  { %785 = vmatpush1.bf16.msra.mxu0 %v1554_v33  ;;  %1330 = vmatprep.subr.mxu1 %v897_v5  ;;  %v190_v33 = vsub.s32 1, %v185_v28 }
  0x75   :  { %786 = vmatprep.subr.bf16.mxu0 %v1559_v34  ;;  %1331 = vmatpush3.msra.mxu1 %v881_v6  ;;  %v1006_v6 = vld [vmem:[%s1840_s5 + $0x70] sm:$0xff] }
  0x76   :  { %1332 = vmatprep.subr.mxu1 %v896_v7 }
  0x77   :  { %1333 = vmatpush3.msra.mxu1 %v880_v8  ;;  %v1005_v8 = vld [vmem:[%s1840_s5 + $0x68] sm:$0xff] }
  0x78   :  { %787 = vmatpush1.bf16.msra.mxu0 %v1557_v35  ;;  %1334 = vmatprep.subr.mxu1 %v895_v9 }
  0x79   :  { %788 = vmatprep.subr.bf16.mxu0 %v1562_v36  ;;  %1335 = vmatpush3.msra.mxu1 %v879_v10  ;;  %v187_v36 = vrot.slane %v182_v32, %v186_v31 }
  0x7a   :  { %1336 = vmatprep.subr.mxu1 %v894_v11  ;;  %v1004_v11 = vld [vmem:[%s1840_s5 + $0x60] sm:$0xff] }
  0x7b   :  { %1337 = vmatpush3.msra.mxu1 %v878_v12  ;;  %v1003_v12 = vld [vmem:[%s1840_s5 + $0x58] sm:$0xff] }
  0x7c   :  { %789 = vmatpush1.bf16.msra.mxu0 %v1560_v37  ;;  %1338 = vmatprep.subr.mxu1 %v893_v13  ;;  %v191_v37 = vrot.slane %v182_v32, %v190_v33  ;;  %v1002_v13 = vld [vmem:[%s1840_s5 + $0x50] sm:$0xff] }
  0x7d   :  { %790 = vmatprep.subr.bf16.mxu0 %v1565_v38  ;;  %1339 = vmatpush3.msra.mxu1 %v877_v14  ;;  %v1001_v14 = vld [vmem:[%s1840_s5 + $0x48] sm:$0xff] }
  0x7e   :  { %1340 = vmatprep.subr.mxu1 %v892_v15  ;;  %v1000_v15 = vld [vmem:[%s1840_s5 + $0x40] sm:$0xff] }
  0x7f   :  { %1341 = vmatpush3.msra.mxu1 %v876_v16  ;;  %v999_v16 = vld [vmem:[%s1840_s5 + $0x38] sm:$0xff] }
  0x80   :  { %791 = vmatpush2.bf16.msra.mxu0 %v1563_v39  ;;  %1342 = vmatprep.subr.mxu1 %v891_v17  ;;  %v998_v17 = vld [vmem:[%s1840_s5 + $0x30] sm:$0xff] }
  0x81   :  { %792 = vmatprep.subr.bf16.mxu0 %v1568_v40  ;;  %1343 = vmatpush3.msra.mxu1 %v875_v18  ;;  %v997_v18 = vld [vmem:[%s1840_s5 + $0x28] sm:$0xff] }
  0x82   :  { %1344 = vmatprep.subr.mxu1 %v890_v19  ;;  %v996_v19 = vld [vmem:[%s1840_s5 + $0x20] sm:$0xff] }
  0x83   :  { %1345 = vmatpush3.msra.mxu1 %v874_v20  ;;  %v995_v20 = vld [vmem:[%s1840_s5 + $0x18] sm:$0xff] }
  0x84   :  { %793 = vmatpush2.bf16.msra.mxu0 %v1566_v41  ;;  %1346 = vmatprep.subr.mxu1 %v889_v21  ;;  %v994_v21 = vld [vmem:[%s1840_s5 + $0x10] sm:$0xff] }
  0x85   :  { %794 = vmatprep.subr.bf16.mxu0 %v1571_v42  ;;  %1347 = vmatpush3.msra.mxu1 %v873_v22  ;;  %v993_v22 = vld [vmem:[%s1840_s5 + $0x8] sm:$0xff] }
  0x86   :  { %1348 = vmatprep.subr.mxu1 %v888_v23  ;;  %v992_v23 = vld [vmem:[%s1840_s5] sm:$0xff] }
  0x87   :  { %1349 = vmatpush3.msra.mxu1 %v872_v24  ;;  %v1103_v24 = vld [vmem:[%s1842_s7 + $0x38] sm:$0xff] }
  0x88   :  { %795 = vmatpush2.bf16.msra.mxu0 %v1569_v43  ;;  %1384 = vmatprep.subr.mxu1 %v1007_v25 }
  0x89   :  { %796 = vmatprep.subr.bf16.mxu0 %v1574_v44 }
  0x8c   :  { %797 = vmatpush2.bf16.msra.mxu0 %v1572_v45 }
  0x8d   :  { %798 = vmatprep.subr.bf16.mxu0 %v1577_v46 }
  0x90   :  { %799 = vmatpush2.bf16.msra.mxu0 %v1575_v47 }
  0x91   :  { %800 = vmatprep.subr.bf16.mxu0 %v1580_v48 }
  0x94   :  { %801 = vmatpush2.bf16.msra.mxu0 %v1578_v49 }
  0x95   :  { %802 = vmatprep.subr.bf16.mxu0 %v1583_v50 }
  0x98   :  { %803 = vmatpush2.bf16.msra.mxu0 %v1581_v51 }
  0x99   :  { %804 = vmatprep.subr.bf16.mxu0 %v1589_v52 }
  0x9c   :  { %805 = vmatpush2.bf16.msra.mxu0 %v1587_v53 }
  0x9d   :  { %1419 = vmatprep.subr.mxu0 %v1103_v24 }
  0x9f   :  { %807 = vmatmul.mubr.bf16.vlgmr.msra.gmra.mxu0 %v81_v56 }
  0xa0   :  { %1420 = vmatpush3.msra.mxu0 %v1103_v24 }
 0x11f   :  { %v722_v29 = vpop.f32.mrf.mxu0 }
 0x120   :  { %v765_v27 = vpop.f32.mrf.mxu1  ;;  %v723_v40 = vadd.f32 %v722_v29, %v187_v36  ;;  %v1313_v29 = vld [vmem:[%s1839_s4] ss:$0 sm:$0xff] }
 0x121   :  { %v724_v34 = vpop.f32.mrf.mxu0 }
 0x122   :  { %v767_v30 = vpop.f32.mrf.mxu1  ;;  %v725_v42 = vadd.f32 %v724_v34, %v191_v37  ;;  %v766_v44 = vadd.f32 %v765_v27, %v723_v40  ;;  %v1100_v27 = vld [vmem:[%s1842_s7 + $0x20] sm:$0xff] }
 0x123   :  { %v726_v38 = vpop.f32.mrf.mxu0 }
 0x124   :  { %v769_v35 = vpop.f32.mrf.mxu1  ;;  %v727_v45 = vadd.f32 %v726_v38, %v187_v36  ;;  %v768_v48 = vadd.f32 %v767_v30, %v725_v42  ;;  %v1098_v42 = vld [vmem:[%s1842_s7 + $0x10] sm:$0xff] }
 0x125   :  { %v728_v43 = vpop.f32.mrf.mxu0 }
 0x126   :  { %v771_v39 = vpop.f32.mrf.mxu1  ;;  %v729_v49 = vadd.f32 %v728_v43, %v191_v37  ;;  %v770_v52 = vadd.f32 %v769_v35, %v727_v45  ;;  %v1097_v43 = vld [vmem:[%s1842_s7 + $0x8] sm:$0xff]  ;;  %v1314_v45 = vld [vmem:[%s1841_s6] ss:$0 sm:$0xff] }
 0x128   :  { %v851_v41 = vpop.f32.mrf.mxu1  ;;  %v772_v57 = vadd.f32 %v771_v39, %v729_v49 }
 0x12a   :  { %v853_v46 = vpop.f32.mrf.mxu1 }
 0x12c   :  { %v855_v55 = vpop.f32.mrf.mxu1 }
 0x12e   :  { %v857_v1 = vpop.f32.mrf.mxu1 }
 0x15f   :  { %v808_v47 = vpop.f32.mrf.mxu0 }
 0x160   :  { %v809_v50 = vadd.f32 %v808_v47, %v766_v44  ;;  %v1096_v44 = vld [vmem:[%s1842_s7] sm:$0xff] }
 0x161   :  { %v810_v51 = vpop.f32.mrf.mxu0 }
 0x162   :  { %v852_v53 = vadd.f32 %v851_v41, %v809_v50  ;;  %v811_v54 = vadd.f32 %v810_v51, %v768_v48  ;;  %v1099_v41 = vld [vmem:[%s1842_s7 + $0x18] sm:$0xff] }
 0x163   :  { %v812_v56 = vpop.f32.mrf.mxu0 }
 0x164   :  { %v854_v58 = vadd.f32 %v853_v46, %v811_v54  ;;  %v813_v59 = vadd.f32 %v812_v56, %v770_v52  ;;  %v864_v60 = vmul.f32 0.2, %v852_v53  ;;  %vm860_vm1 = vcmp.ge.f32.partialorder %v852_v53, 0.0  ;;  %v1317_v54 = vld [vmem:[#allocation2] ss:$0 sm:$0xff] }
 0x165   :  { %v814_v61 = vpop.f32.mrf.mxu0 }
 0x166   :  { %v856_v62 = vadd.f32 %v855_v55, %v813_v59  ;;  %v815_v63 = vadd.f32 %v814_v61, %v772_v57  ;;  %vm861_vm2 = vcmp.ge.f32.partialorder %v854_v58, 0.0  ;;  %v865_v0 = vmul.f32 0.2, %v854_v58 }
 0x167   :  { %v868_v4 = vsel %vm860_vm1, %v852_v53, %v864_v60 }
 0x168   :  { %v858_v2 = vadd.f32 %v857_v1, %v815_v63  ;;  %v869_v3 = vsel %vm861_vm2, %v854_v58, %v865_v0  ;;  %v866_v5 = vmul.f32 0.2, %v856_v62  ;;  %vm862_vm4 = vcmp.ge.f32.partialorder %v856_v62, 0.0 }
 0x169   :  { %975 = vmatprep.mubr.f32.mxu1 %v869_v3 }
 0x16a   :  { %976 = vmatmul.mubr.f32.vlgmr.msra.gmra.mxu1 %v868_v4  ;;  %vm863_vm3 = vcmp.ge.f32.partialorder %v858_v2, 0.0  ;;  %v867_v7 = vmul.f32 0.2, %v858_v2  ;;  %v870_v10 = vsel %vm862_vm4, %v856_v62, %v866_v5 }
 0x16b   :  { %1385 = vmatpush3.msra.mxu1 %v1007_v25  ;;  %v1102_v25 = vld [vmem:[%s1842_s7 + $0x30] sm:$0xff] }
 0x16c   :  { %v871_v9 = vsel %vm863_vm3, %v858_v2, %v867_v7  ;;  %1386 = vmatprep.subr.mxu1 %v1006_v6  ;;  %1421 = vmatprep.subr.mxu0 %v1102_v25 }
 0x16d   :  { %980 = vmatprep.mubr.f32.mxu1 %v871_v9  ;;  %1387 = vmatpush3.msra.mxu1 %v1006_v6 }
 0x16e   :  { %981 = vmatmul.mubr.f32.gmra.mxu1 %v870_v10  ;;  %1388 = vmatprep.subr.mxu1 %v1005_v8 }
 0x16f   :  { %1389 = vmatpush3.msra.mxu1 %v1005_v8  ;;  %1422 = vmatpush3.msra.mxu0 %v1102_v25 }
 0x170   :  { %1390 = vmatprep.subr.mxu1 %v1004_v11  ;;  %1423 = vmatprep.subr.mxu0 %v1101_v26 }
 0x171   :  { %1391 = vmatpush3.msra.mxu1 %v1004_v11  ;;  %1424 = vmatpush3.msra.mxu0 %v1101_v26 }
 0x172   :  { %1392 = vmatprep.subr.mxu1 %v1003_v12  ;;  %1425 = vmatprep.subr.mxu0 %v1100_v27 }
 0x173   :  { %1393 = vmatpush3.msra.mxu1 %v1003_v12  ;;  %1426 = vmatpush3.msra.mxu0 %v1100_v27 }
 0x174   :  { %1394 = vmatprep.subr.mxu1 %v1002_v13  ;;  %1427 = vmatprep.subr.mxu0 %v1099_v41 }
 0x175   :  { %1395 = vmatpush3.msra.mxu1 %v1002_v13  ;;  %1428 = vmatpush3.msra.mxu0 %v1099_v41 }
 0x176   :  { %1396 = vmatprep.subr.mxu1 %v1001_v14  ;;  %1429 = vmatprep.subr.mxu0 %v1098_v42 }
 0x177   :  { %1397 = vmatpush3.msra.mxu1 %v1001_v14  ;;  %1430 = vmatpush3.msra.mxu0 %v1098_v42 }
 0x178   :  { %1398 = vmatprep.subr.mxu1 %v1000_v15  ;;  %1431 = vmatprep.subr.mxu0 %v1097_v43 }
 0x179   :  { %1399 = vmatpush3.msra.mxu1 %v1000_v15  ;;  %1432 = vmatpush3.msra.mxu0 %v1097_v43 }
 0x17a   :  { %1400 = vmatprep.subr.mxu1 %v999_v16  ;;  %1433 = vmatprep.subr.mxu0 %v1096_v44 }
 0x17b   :  { %1401 = vmatpush3.msra.mxu1 %v999_v16  ;;  %1434 = vmatpush3.msra.mxu0 %v1096_v44 }
 0x17c   :  { %1402 = vmatprep.subr.mxu1 %v998_v17 }
 0x17d   :  { %1403 = vmatpush3.msra.mxu1 %v998_v17 }
 0x17e   :  { %1404 = vmatprep.subr.mxu1 %v997_v18 }
 0x17f   :  { %1405 = vmatpush3.msra.mxu1 %v997_v18 }
 0x180   :  { %1406 = vmatprep.subr.mxu1 %v996_v19 }
 0x181   :  { %1407 = vmatpush3.msra.mxu1 %v996_v19 }
 0x182   :  { %1408 = vmatprep.subr.mxu1 %v995_v20 }
 0x183   :  { %1409 = vmatpush3.msra.mxu1 %v995_v20 }
 0x184   :  { %1410 = vmatprep.subr.mxu1 %v994_v21 }
 0x185   :  { %1411 = vmatpush3.msra.mxu1 %v994_v21 }
 0x186   :  { %1412 = vmatprep.subr.mxu1 %v993_v22 }
 0x187   :  { %1413 = vmatpush3.msra.mxu1 %v993_v22 }
 0x188   :  { %1414 = vmatprep.subr.mxu1 %v992_v23 }
 0x189   :  { %1415 = vmatpush3.msra.mxu1 %v992_v23 }
 0x22a   :  { %v1350_v28 = vpop.f32.mrf.mxu1 }
 0x22c   :  { %v1351_v30 = vpop.f32.mrf.mxu1 }
 0x22d   :  { %v1352_v31 = vadd.f32 %v1351_v30, %v1350_v28 }
 0x22e   :  { %v1353_v32 = vpop.f32.mrf.mxu1 }
 0x22f   :  { %v978_v33 = vadd.f32 %v1352_v31, %v1313_v29 }
 0x230   :  { %v1354_v34 = vpop.f32.mrf.mxu1 }
 0x231   :  { %v1355_v35 = vadd.f32 %v1354_v34, %v1353_v32  ;;  %vm986_vm5 = vcmp.ge.f32.partialorder %v978_v33, 0.0  ;;  %v988_v36 = vmul.f32 0.2, %v978_v33 }
 0x233   :  { %v983_v37 = vadd.f32 %v1355_v35, %v1313_v29  ;;  %v990_v38 = vsel %vm986_vm5, %v978_v33, %v988_v36 }
 0x234   :  { %1416 = vmatprep.mubr.f32.mxu1 %v990_v38 }
 0x235   :  { %vm987_vm6 = vcmp.ge.f32.partialorder %v983_v37, 0.0  ;;  %v989_v39 = vmul.f32 0.2, %v983_v37 }
 0x237   :  { %v991_v40 = vsel %vm987_vm6, %v983_v37, %v989_v39 }
 0x238   :  { %1417 = vmatmul.mubr.f32.vlgmr.msra.gmra.mxu1 %v991_v40 }
 0x2f8   :  { %v1418_v46 = vpop.f32.mrf.mxu1 }
 0x2f9   :  { %v1087_v47 = vadd.f32 %v1418_v46, %v1314_v45 }
 0x2fa   :  { %v1081_v48 = vpop.f32.mrf.mxu1 }
 0x2fb   :  { %v1082_v49 = vadd.f32 %v1314_v45, %v1081_v48  ;;  %v1093_v50 = vmul.f32 0.2, %v1087_v47  ;;  %vm1091_vm7 = vcmp.ge.f32.partialorder %v1087_v47, 0.0 }
 0x2fd   :  { %vm1090_vm8 = vcmp.ge.f32.partialorder %v1082_v49, 0.0  ;;  %v1092_v51 = vmul.f32 0.2, %v1082_v49  ;;  %v1095_v53 = vsel %vm1091_vm7, %v1087_v47, %v1093_v50 }
 0x2ff   :  { %v1094_v52 = vsel %vm1090_vm8, %v1082_v49, %v1092_v51 }
 0x300   :  { %1435 = vmatprep.mubr.msk.f32.mxu0 %vm1104_vm9, %v1094_v52 }
 0x301   :  { %1436 = vmatmul.mubr.msk.f32.vlgmr.msra.gmra.mxu0 %vm1104_vm9, %v1095_v53 }
 0x3c1   :  { %v1437_v55 = vpop.f32.mrf.mxu0 }
 0x3c2   :  { %v1194_v56 = vadd.f32 %v1437_v55, %v1317_v54 }
 0x3c3   :  { %v1177_v57 = vpop.f32.mrf.mxu0 }
 0x3c4   :  { %v1196_v58 = vsub.f32 0.0, %v1194_v56  ;;  %v1193_v59 = vadd.f32 %v1317_v54, %v1177_v57 }
 0x3c6   :  { %v1199_v60 = vmul.f32 1.442695, %v1196_v58  ;;  %v1195_v61 = vsub.f32 0.0, %v1193_v59 }
 0x3c8   :  { %1590 = vpow2.f32 %v1199_v60  ;;  %v1197_v62 = vmul.f32 1.442695, %v1195_v61 }
 0x3ca   :  { %1592 = vpow2.f32 %v1197_v62 }
 0x3d5   :  { %v1591_v63 = vpop.eup %1590 }
 0x3d6   :  { %v1202_v0 = vadd.f32 1.0, %v1591_v63 }
 0x3d7   :  { %v1593_v1 = vpop.eup %1592 }
 0x3d8   :  { %1594 = vrcp.f32 %v1202_v0  ;;  %v1201_v2 = vadd.f32 1.0, %v1593_v1 }
 0x3da   :  { %1596 = vrcp.f32 %v1201_v2 }
 0x3e5   :  { %v1595_v3 = vpop.eup %1594 }
 0x3e6   :  { %1207 = vst.msk [vmem:[%s1844_s9 + $0x8] sm:$0xff] %vm1205_vm10, %v1595_v3 }
 0x3e7   :  { %v1597_v4 = vpop.eup %1596 }
 0x3e8   :  { %1206 = vst.msk [vmem:[%s1844_s9] sm:$0xff] %vm1205_vm10, %v1597_v4 }
 0x3e9   :  { %1212 = vsyncpa [#allocation4], 1 }
 0x3ea   :  { %1213 = vsyncpa [#allocation6], 1 }

</bundles_post_ra>
